<compile_context>
chip_gen: v7x
topology: tpu7x:2x2x1
jax: 0.10.0
libtpu: 0.0.40
codegen_flags: <defaults>
</compile_context>

<pallas_src>
import functools

import jax
import jax.numpy as jnp
from jax.experimental import pallas as pl
from jax.experimental.pallas import tpu as pltpu

_INV_SQRT2 = 0.7071067811865476
_SQRT_2_OVER_PI = 0.7978845608028654
_BN_EPS = 1e-5


def _round_up(x, n):
    return ((x + n - 1) // n) * n


# ----------------------------------------------------------------------------
# Pass 1: per-core, per-channel [sum; sum_sq] of h = x @ W1.
# ----------------------------------------------------------------------------
def _stats_kernel(x_ref, w1_ref, stats_ref):
    @pl.when(pl.program_id(1) == 0)          # first M tile of this core
    def _():
        stats_ref[...] = jnp.zeros_like(stats_ref)

    # bf16 MXU matmul, f32 accumulation.
    h = jnp.dot(x_ref[...], w1_ref[...], preferred_element_type=jnp.float32)
    stats_ref[0:1, :] += jnp.sum(h, axis=0, keepdims=True)
    stats_ref[1:2, :] += jnp.sum(h * h, axis=0, keepdims=True)


# ----------------------------------------------------------------------------
# Pass 2: recompute h, folded BN (one FMA), GELU, second matmul.
# ----------------------------------------------------------------------------
def _apply_kernel(x_ref, w1_ref, ss_ref, w2_ref, b2_ref, o_ref, *, approx_gelu):
    h = jnp.dot(x_ref[...], w1_ref[...], preferred_element_type=jnp.float32)
    hn = h * ss_ref[0:1, :] + ss_ref[1:2, :]           # BatchNorm, folded
    if approx_gelu:
        # tanh approximation -> transcendental lands on the EUP slot.
        g = 0.5 * hn * (1.0 + jnp.tanh(_SQRT_2_OVER_PI *
                                       (hn + 0.044715 * hn * hn * hn)))
    else:
        g = 0.5 * hn * (1.0 + jax.lax.erf(hn * _INV_SQRT2))   # exact nn.GELU()
    out = jnp.dot(g.astype(w2_ref.dtype), w2_ref[...],
                  preferred_element_type=jnp.float32) + b2_ref[...]
    o_ref[...] = out.astype(o_ref.dtype)


# ----------------------------------------------------------------------------
# Tiling / VMEM planning.
# ----------------------------------------------------------------------------
def _vmem_plan():
    cap = 64 * 1024 * 1024                  # conservative default (v7x 64 MiB)
    try:
        cap = int(pltpu.get_tpu_info().vmem_capacity_bytes)
    except Exception:
        pass
    limit = min(int(cap * 0.85), 100 * 1024 * 1024)
    budget = int(limit * 0.70)              # tile-sizing budget with headroom
    return budget, limit


def _choose_tm(m, dp, hp, budget, in_bpe, out_bpe):
    """Row-tile size; None if resident weights cannot fit the VMEM budget."""
    # W1 + W2 resident, single-buffered (pl.Buffered(1)) + small f32 vectors.
    fixed = 2 * dp * hp * in_bpe + (4 * hp + dp) * 4
    # Per row: x tile (2 bufs, bf16) + out tile (2 bufs) + f32 h/hn/g temps.
    per_row = 2 * dp * in_bpe + 2 * dp * out_bpe + 3 * hp * 4
    avail = budget - fixed
    if avail < 8 * per_row:
        return None
    tm_cap = min(avail // per_row, 4096)
    align = 256 if min(tm_cap, pl.cdiv(m, 2)) >= 256 else 8
    tm_cap = max((tm_cap // align) * align, align)
    # Fewer, bigger, equal tiles: split rows over 2 * n_half tiles.
    n_half = pl.cdiv(m, 2 * tm_cap)
    return min(_round_up(pl.cdiv(m, 2 * n_half), align), tm_cap)


def _xla_fallback(x2, w1, gamma, beta, w2, b2):
    h = jnp.dot(x2, w1, preferred_element_type=jnp.float32)
    mean = jnp.mean(h, axis=0, keepdims=True)
    var = jnp.maximum(jnp.mean(h * h, axis=0, keepdims=True) - mean * mean, 0.0)
    scale = gamma[None, :].astype(jnp.float32) * jax.lax.rsqrt(var + _BN_EPS)
    shift = beta[None, :].astype(jnp.float32) - mean * scale
    hn = h * scale + shift
    g = 0.5 * hn * (1.0 + jax.lax.erf(hn * _INV_SQRT2))
    return jnp.dot(g.astype(w2.dtype), w2,
                   preferred_element_type=jnp.float32) + b2[None, :]


# ----------------------------------------------------------------------------
# Wrapper.
# ----------------------------------------------------------------------------
@functools.partial(jax.jit, static_argnames=("tm", "approx_gelu"))
def feedforward(x, w1, gamma, beta, w2, b2, *, tm=None, approx_gelu=False):
    """x: (B, N, D) -> (B, N, D).  Training-mode BatchNorm semantics."""
    B, N, D = x.shape
    H = w1.shape[1]
    M = B * N
    out_dtype = x.dtype
    out_bpe = jnp.dtype(out_dtype).itemsize
    mxu_dtype = jnp.bfloat16            # MXU operands bf16, f32 accumulation
    in_bpe = 2

    Dp = _round_up(D, 128)              # lane-dense last dims; zero-pad is exact
    Hp = _round_up(H, 128)

    budget, vmem_limit = _vmem_plan()
    if tm is not None:
        TM = max(8, (min(int(tm), _round_up(M, 8)) // 8) * 8)
    else:
        TM = _choose_tm(M, Dp, Hp, budget, in_bpe, out_bpe)
    if TM is None:
        # TODO(synk): weight-tiled Pallas path for D*H too large to keep
        # W1/W2 resident in VMEM; XLA fallback keeps huge models correct.
        out = _xla_fallback(x.reshape(M, D).astype(mxu_dtype),
                            w1.astype(mxu_dtype), gamma, beta,
                            w2.astype(mxu_dtype), b2.astype(jnp.float32))
        return out.astype(out_dtype).reshape(B, N, D)

    n_half = pl.cdiv(M, 2 * TM)         # M tiles per core in the stats pass
    n_tiles = 2 * n_half
    M_pad = n_tiles * TM

    # Zero padding: padded rows / channels contribute exactly zero to the BN
    # sums, padded output columns are sliced away below.
    xp = jnp.pad(x.reshape(M, D).astype(mxu_dtype),
                 ((0, M_pad - M), (0, Dp - D)))
    w1p = jnp.pad(w1.astype(mxu_dtype), ((0, Dp - D), (0, Hp - H)))
    w2p = jnp.pad(w2.astype(mxu_dtype), ((0, Hp - H), (0, Dp - D)))
    b2p = jnp.pad(b2.astype(jnp.float32), (0, Dp - D)).reshape(1, Dp)
    gammap = jnp.pad(gamma.astype(jnp.float32), (0, Hp - H))
    betap = jnp.pad(beta.astype(jnp.float32), (0, Hp - H))

    one_buf = pl.Buffered(1)            # grid-invariant blocks: single buffer

    # ---- Pass 1: BN statistics, per-core accumulator ("parallel" x "arbitrary")
    stats = pl.pallas_call(
        _stats_kernel,
        grid=(2, n_half),
        in_specs=[
            pl.BlockSpec((TM, Dp), lambda c, i: (c * n_half + i, 0)),
            pl.BlockSpec((Dp, Hp), lambda c, i: (0, 0), pipeline_mode=one_buf),
        ],
        out_specs=pl.BlockSpec((None, 2, Hp), lambda c, i: (c, 0, 0)),
        out_shape=jax.ShapeDtypeStruct((2, 2, Hp), jnp.float32),
        compiler_params=pltpu.CompilerParams(
            dimension_semantics=("parallel", "arbitrary"),
            vmem_limit_bytes=vmem_limit),
    )(xp, w1p)

    # ---- Tiny (2, Hp) BN fold in plain JAX (f32, biased variance) ----
    tot = jnp.sum(stats, axis=0)                       # reduce core partials
    mean = tot[0:1, :] * (1.0 / M)                     # true M, not padded
    var = jnp.maximum(tot[1:2, :] * (1.0 / M) - mean * mean, 0.0)
    scale = gammap[None, :] * jax.lax.rsqrt(var + _BN_EPS)
    shift = betap[None, :] - mean * scale
    ss = jnp.concatenate([scale, shift], axis=0)       # (2, Hp) f32

    # ---- Pass 2: normalize + GELU + W2, M axis "parallel" (megacore) ----
    row_spec = pl.BlockSpec((TM, Dp), lambda i: (i, 0))
    outp = pl.pallas_call(
        functools.partial(_apply_kernel, approx_gelu=approx_gelu),
        grid=(n_tiles,),
        in_specs=[
            row_spec,
            pl.BlockSpec((Dp, Hp), lambda i: (0, 0), pipeline_mode=one_buf),
            pl.BlockSpec((2, Hp), lambda i: (0, 0), pipeline_mode=one_buf),
            pl.BlockSpec((Hp, Dp), lambda i: (0, 0), pipeline_mode=one_buf),
            pl.BlockSpec((1, Dp), lambda i: (0, 0), pipeline_mode=one_buf),
        ],
        out_specs=row_spec,
        out_shape=jax.ShapeDtypeStruct((M_pad, Dp), out_dtype),
        compiler_params=pltpu.CompilerParams(
            dimension_semantics=("parallel",),
            vmem_limit_bytes=vmem_limit),
    )(xp, w1p, ss, w2p, b2p)

    return outp[:M, :D].reshape(B, N, D)


# ----------------------------------------------------------------------------
# Deterministic synthetic init (PyTorch-Linear-like bounds) and references.
# ----------------------------------------------------------------------------
def init_params(key, dim, hidden_dim):
    k1, k2, k3, k4 = jax.random.split(key, 4)
    bound1 = 1.0 / jnp.sqrt(dim)
    bound2 = 1.0 / jnp.sqrt(hidden_dim)
    w1 = jax.random.uniform(k1, (dim, hidden_dim), jnp.float32, -bound1, bound1)
    b1 = jax.random.uniform(k2, (hidden_dim,), jnp.float32, -bound1, bound1)
    gamma = jnp.ones((hidden_dim,), jnp.float32)    # BatchNorm1d weight init
    beta = jnp.zeros((hidden_dim,), jnp.float32)    # BatchNorm1d bias init
    w2 = jax.random.uniform(k3, (hidden_dim, dim), jnp.float32, -bound2, bound2)
    b2 = jax.random.uniform(k4, (dim,), jnp.float32, -bound2, bound2)
    return w1, b1, gamma, beta, w2, b2


def _reference(x, w1, b1, gamma, beta, w2, b2):
    """Exact f32 module semantics (b1 kept: it cancels inside training BN)."""
    B, N, D = x.shape
    h = x.reshape(B * N, D) @ w1 + b1
    mean = h.mean(0, keepdims=True)
    var = ((h - mean) ** 2).mean(0, keepdims=True)
    hn = (h - mean) / jnp.sqrt(var + _BN_EPS) * gamma + beta
    g = 0.5 * hn * (1.0 + jax.lax.erf(hn * _INV_SQRT2))
    return (g @ w2 + b2).reshape(B, N, D)


def _mixed_reference(x, w1, gamma, beta, w2, b2):
    """Mirrors the kernel's mixed precision (bf16 MXU operands, f32 math)."""
    B, N, D = x.shape
    xb = x.reshape(B * N, D).astype(jnp.bfloat16)
    h = jnp.dot(xb, w1.astype(jnp.bfloat16), preferred_element_type=jnp.float32)
    mean = h.mean(0, keepdims=True)
    var = jnp.maximum((h * h).mean(0, keepdims=True) - mean * mean, 0.0)
    scale = gamma[None, :] * jax.lax.rsqrt(var + _BN_EPS)
    shift = beta[None, :] - mean * scale
    hn = h * scale + shift
    g = 0.5 * hn * (1.0 + jax.lax.erf(hn * _INV_SQRT2))
    out = jnp.dot(g.astype(jnp.bfloat16), w2.astype(jnp.bfloat16),
                  preferred_element_type=jnp.float32) + b2[None, :]
    return out.astype(x.dtype).reshape(B, N, D)


if __name__ == "__main__":
    # hidden_dim must equal dim for the module's BatchNorm1d(dim) to be valid.
    B, N, D = 2, 8, 32
    H = D

    key = jax.random.PRNGKey(0)
    kx, kp = jax.random.split(key)
    x = jax.random.normal(kx, (B, N, D), jnp.float32)
    w1, b1, gamma, beta, w2, b2 = init_params(kp, D, H)

    # Single-tile path.
    y = feedforward(x, w1, gamma, beta, w2, b2)
    jax.block_until_ready(y)
    # Tight check vs a same-precision (bf16 MXU) reference.
    mref = _mixed_reference(x, w1, gamma, beta, w2, b2)
    assert jnp.allclose(y, mref, atol=2e-3, rtol=2e-3), "mismatch (mixed, small)"
    # Loose check vs the exact f32 module reference (tolerance reflects bf16).
    ref = _reference(x, w1, b1, gamma, beta, w2, b2)
    assert jnp.allclose(y, ref, atol=5e-2, rtol=5e-2), "mismatch (f32, small)"

    # Multi-tile + zero-padded-tail path (forces a small M tile to exercise
    # the grid, per-core stats accumulator, resident weights, row padding).
    x_big = jax.random.normal(jax.random.PRNGKey(1), (3, 67, D), jnp.float32)
    y_big = feedforward(x_big, w1, gamma, beta, w2, b2, tm=64)
    jax.block_until_ready(y_big)
    mref_big = _mixed_reference(x_big, w1, gamma, beta, w2, b2)
    assert jnp.allclose(y_big, mref_big, atol=2e-3, rtol=2e-3), "mismatch (mixed, tiled)"
    ref_big = _reference(x_big, w1, b1, gamma, beta, w2, b2)
    assert jnp.allclose(y_big, ref_big, atol=5e-2, rtol=5e-2), "mismatch (f32, tiled)"

    # Optional tanh-approx GELU (EUP path); compared only against the f32
    # reference since the approximation itself deviates by ~1e-3.
    y_t = feedforward(x_big, w1, gamma, beta, w2, b2, tm=64, approx_gelu=True)
    jax.block_until_ready(y_t)
    assert jnp.allclose(y_t, ref_big, atol=5e-2, rtol=5e-2), "mismatch (tanh gelu)"

    print("KERNEL_OK")
</pallas_src>

<mosaic_0001>
module attributes {stable_mosaic.version = 11 : i64} {
  func.func @_stats_kernel(%arg0: i32, %arg1: i32, %arg2: memref<8x128xbf16, #tpu.memory_space<vmem>>, %arg3: memref<128x128xbf16, #tpu.memory_space<vmem>>, %arg4: memref<1x2x128xf32, #tpu.memory_space<vmem>>) attributes {dimension_semantics = [#tpu.dimension_semantics<parallel>, #tpu.dimension_semantics<arbitrary>], iteration_bounds = array<i64: 2, 1>, scalar_prefetch = 0 : i64, scratch_operands = 0 : i64, tpu.core_type = #tpu.core_type<tc>, window_params = [{transform_indices = @transform_0, window_bounds = array<i64: 8, 128>}, {pipeline_mode = #tpu.pipeline_mode<synchronous>, transform_indices = @transform_1, window_bounds = array<i64: 128, 128>}, {transform_indices = @transform_2, window_bounds = array<i64: 1, 2, 128>}]} {
    %c0_i32 = arith.constant 0 : i32
    %0 = arith.cmpi eq, %arg1, %c0_i32 : i32
    %1 = arith.extui %0 : i1 to i32
    %c0_i32_0 = arith.constant 0 : i32
    %2 = arith.cmpi ne, %1, %c0_i32_0 : i32
    scf.if %2 {
      %cst_17 = arith.constant 0.000000e+00 : f32
      %23 = vector.broadcast %cst_17 : f32 to vector<2x128xf32>
      %c0_18 = arith.constant 0 : index
      %c0_19 = arith.constant 0 : index
      %c0_20 = arith.constant 0 : index
      %24 = vector.load %arg4[%c0_18, %c0_19, %c0_20] : memref<1x2x128xf32, #tpu.memory_space<vmem>>, vector<1x2x128xf32>
      %25 = vector.shape_cast %24 : vector<1x2x128xf32> to vector<2x128xf32>
      %26 = vector.shape_cast %23 : vector<2x128xf32> to vector<1x2x128xf32>
      tpu.vector_store %arg4[%c0_18, %c0_19, %c0_20], %26 {strides = array<i32>} : memref<1x2x128xf32, #tpu.memory_space<vmem>>, vector<1x2x128xf32>,
    } else {
    }
    %c0 = arith.constant 0 : index
    %c0_1 = arith.constant 0 : index
    %3 = vector.load %arg2[%c0, %c0_1] : memref<8x128xbf16, #tpu.memory_space<vmem>>, vector<8x128xbf16>
    %c0_2 = arith.constant 0 : index
    %c0_3 = arith.constant 0 : index
    %4 = vector.load %arg3[%c0_2, %c0_3] : memref<128x128xbf16, #tpu.memory_space<vmem>>, vector<128x128xbf16>
    %cst = arith.constant dense<0.000000e+00> : vector<8x128xf32>
    %5 = tpu.matmul %3, %4, %cst {dimension_numbers = #tpu.dot_dimension_numbers<[1], [0], [0], [1], [0, 0, 1, 1], [], []>} : vector<8x128xbf16>, vector<128x128xbf16>, vector<8x128xf32> -> vector<8x128xf32>
    %c0_4 = arith.constant 0 : index
    %c0_5 = arith.constant 0 : index
    %c0_6 = arith.constant 0 : index
    %6 = vector.load %arg4[%c0_4, %c0_5, %c0_6] : memref<1x2x128xf32, #tpu.memory_space<vmem>>, vector<1x1x128xf32>
    %7 = vector.shape_cast %6 : vector<1x1x128xf32> to vector<1x128xf32>
    %cst_7 = arith.constant dense<0.000000e+00> : vector<128xf32>
    %8 = vector.multi_reduction <add>, %5, %cst_7 [0] : vector<8x128xf32> to vector<128xf32>
    %9 = vector.shape_cast %8 : vector<128xf32> to vector<1x128xf32>
    %10 = arith.addf %7, %9 : vector<1x128xf32>
    %c0_8 = arith.constant 0 : index
    %c0_9 = arith.constant 0 : index
    %c0_10 = arith.constant 0 : index
    %11 = vector.load %arg4[%c0_8, %c0_9, %c0_10] : memref<1x2x128xf32, #tpu.memory_space<vmem>>, vector<1x1x128xf32>
    %12 = vector.shape_cast %11 : vector<1x1x128xf32> to vector<1x128xf32>
    %13 = vector.shape_cast %10 : vector<1x128xf32> to vector<1x1x128xf32>
    tpu.vector_store %arg4[%c0_8, %c0_9, %c0_10], %13 {strides = array<i32>} : memref<1x2x128xf32, #tpu.memory_space<vmem>>, vector<1x1x128xf32>,
    %c0_11 = arith.constant 0 : index
    %c1 = arith.constant 1 : index
    %c0_12 = arith.constant 0 : index
    %14 = vector.load %arg4[%c0_11, %c1, %c0_12] : memref<1x2x128xf32, #tpu.memory_space<vmem>>, vector<1x1x128xf32>
    %15 = vector.shape_cast %14 : vector<1x1x128xf32> to vector<1x128xf32>
    %16 = arith.mulf %5, %5 : vector<8x128xf32>
    %cst_13 = arith.constant dense<0.000000e+00> : vector<128xf32>
    %17 = vector.multi_reduction <add>, %16, %cst_13 [0] : vector<8x128xf32> to vector<128xf32>
    %18 = vector.shape_cast %17 : vector<128xf32> to vector<1x128xf32>
    %19 = arith.addf %15, %18 : vector<1x128xf32>
    %c0_14 = arith.constant 0 : index
    %c1_15 = arith.constant 1 : index
    %c0_16 = arith.constant 0 : index
    %20 = vector.load %arg4[%c0_14, %c1_15, %c0_16] : memref<1x2x128xf32, #tpu.memory_space<vmem>>, vector<1x1x128xf32>
    %21 = vector.shape_cast %20 : vector<1x1x128xf32> to vector<1x128xf32>
    %22 = vector.shape_cast %19 : vector<1x128xf32> to vector<1x1x128xf32>
    tpu.vector_store %arg4[%c0_14, %c1_15, %c0_16], %22 {strides = array<i32>} : memref<1x2x128xf32, #tpu.memory_space<vmem>>, vector<1x1x128xf32>,
    return
  }
  func.func @transform_0(%arg0: i32, %arg1: i32) -> (i32, i32) {
    %c1_i32 = arith.constant 1 : i32
    %0 = arith.muli %arg0, %c1_i32 : i32
    %1 = arith.addi %0, %arg1 : i32
    %c0_i32 = arith.constant 0 : i32
    %c0_i32_0 = arith.constant 0 : i32
    return %1, %c0_i32 : i32, i32
  }
  func.func @transform_1(%arg0: i32, %arg1: i32) -> (i32, i32) {
    %c0_i32 = arith.constant 0 : i32
    %c0_i32_0 = arith.constant 0 : i32
    %c0_i32_1 = arith.constant 0 : i32
    return %c0_i32, %c0_i32_0 : i32, i32
  }
  func.func @transform_2(%arg0: i32, %arg1: i32) -> (i32, i32, i32) {
    %c0_i32 = arith.constant 0 : i32
    %c0_i32_0 = arith.constant 0 : i32
    %c0_i32_1 = arith.constant 0 : i32
    return %arg0, %c0_i32, %c0_i32_0 : i32, i32, i32
  }
}

module attributes {stable_mosaic.version = 11 : i64} {
  func.func @_apply_kernel(%arg0: i32, %arg1: memref<8x128xbf16, #tpu.memory_space<vmem>>, %arg2: memref<128x128xbf16, #tpu.memory_space<vmem>>, %arg3: memref<2x128xf32, #tpu.memory_space<vmem>>, %arg4: memref<128x128xbf16, #tpu.memory_space<vmem>>, %arg5: memref<1x128xf32, #tpu.memory_space<vmem>>, %arg6: memref<8x128xf32, #tpu.memory_space<vmem>>) attributes {dimension_semantics = [#tpu.dimension_semantics<parallel>], iteration_bounds = array<i64: 2>, scalar_prefetch = 0 : i64, scratch_operands = 0 : i64, tpu.core_type = #tpu.core_type<tc>, window_params = [{transform_indices = @transform_0, window_bounds = array<i64: 8, 128>}, {pipeline_mode = #tpu.pipeline_mode<synchronous>, transform_indices = @transform_1, window_bounds = array<i64: 128, 128>}, {pipeline_mode = #tpu.pipeline_mode<synchronous>, transform_indices = @transform_2, window_bounds = array<i64: 2, 128>}, {pipeline_mode = #tpu.pipeline_mode<synchronous>, transform_indices = @transform_3, window_bounds = array<i64: 128, 128>}, {pipeline_mode = #tpu.pipeline_mode<synchronous>, transform_indices = @transform_4, window_bounds = array<i64: 1, 128>}, {transform_indices = @transform_5, window_bounds = array<i64: 8, 128>}]} {
    %c0 = arith.constant 0 : index
    %c0_0 = arith.constant 0 : index
    %0 = vector.load %arg1[%c0, %c0_0] : memref<8x128xbf16, #tpu.memory_space<vmem>>, vector<8x128xbf16>
    %c0_1 = arith.constant 0 : index
    %c0_2 = arith.constant 0 : index
    %1 = vector.load %arg2[%c0_1, %c0_2] : memref<128x128xbf16, #tpu.memory_space<vmem>>, vector<128x128xbf16>
    %cst = arith.constant dense<0.000000e+00> : vector<8x128xf32>
    %2 = tpu.matmul %0, %1, %cst {dimension_numbers = #tpu.dot_dimension_numbers<[1], [0], [0], [1], [0, 0, 1, 1], [], []>} : vector<8x128xbf16>, vector<128x128xbf16>, vector<8x128xf32> -> vector<8x128xf32>
    %c0_3 = arith.constant 0 : index
    %c0_4 = arith.constant 0 : index
    %3 = vector.load %arg3[%c0_3, %c0_4] : memref<2x128xf32, #tpu.memory_space<vmem>>, vector<1x128xf32>
    %4 = vector.broadcast %3 : vector<1x128xf32> to vector<8x128xf32>
    %5 = arith.mulf %2, %4 : vector<8x128xf32>
    %c1 = arith.constant 1 : index
    %c0_5 = arith.constant 0 : index
    %6 = vector.load %arg3[%c1, %c0_5] : memref<2x128xf32, #tpu.memory_space<vmem>>, vector<1x128xf32>
    %7 = vector.broadcast %6 : vector<1x128xf32> to vector<8x128xf32>
    %8 = arith.addf %5, %7 : vector<8x128xf32>
    %cst_6 = arith.constant 5.000000e-01 : f32
    %9 = vector.broadcast %cst_6 : f32 to vector<8x128xf32>
    %10 = arith.mulf %9, %8 : vector<8x128xf32>
    %cst_7 = arith.constant 0.707106769 : f32
    %11 = vector.broadcast %cst_7 : f32 to vector<8x128xf32>
    %12 = arith.mulf %8, %11 : vector<8x128xf32>
    %13 = math.erf %12 : vector<8x128xf32>
    %cst_8 = arith.constant 1.000000e+00 : f32
    %14 = vector.broadcast %cst_8 : f32 to vector<8x128xf32>
    %15 = arith.addf %14, %13 : vector<8x128xf32>
    %16 = arith.mulf %10, %15 : vector<8x128xf32>
    %17 = arith.truncf %16 : vector<8x128xf32> to vector<8x128xbf16>
    %c0_9 = arith.constant 0 : index
    %c0_10 = arith.constant 0 : index
    %18 = vector.load %arg4[%c0_9, %c0_10] : memref<128x128xbf16, #tpu.memory_space<vmem>>, vector<128x128xbf16>
    %cst_11 = arith.constant dense<0.000000e+00> : vector<8x128xf32>
    %19 = tpu.matmul %17, %18, %cst_11 {dimension_numbers = #tpu.dot_dimension_numbers<[1], [0], [0], [1], [0, 0, 1, 1], [], []>} : vector<8x128xbf16>, vector<128x128xbf16>, vector<8x128xf32> -> vector<8x128xf32>
    %c0_12 = arith.constant 0 : index
    %c0_13 = arith.constant 0 : index
    %20 = vector.load %arg5[%c0_12, %c0_13] : memref<1x128xf32, #tpu.memory_space<vmem>>, vector<1x128xf32>
    %21 = vector.broadcast %20 : vector<1x128xf32> to vector<8x128xf32>
    %22 = arith.addf %19, %21 : vector<8x128xf32>
    %c0_14 = arith.constant 0 : index
    %c0_15 = arith.constant 0 : index
    %23 = vector.load %arg6[%c0_14, %c0_15] : memref<8x128xf32, #tpu.memory_space<vmem>>, vector<8x128xf32>
    tpu.vector_store %arg6[%c0_14, %c0_15], %22 {strides = array<i32>} : memref<8x128xf32, #tpu.memory_space<vmem>>, vector<8x128xf32>,
    return
  }
  func.func @transform_0(%arg0: i32) -> (i32, i32) {
    %c0_i32 = arith.constant 0 : i32
    %c0_i32_0 = arith.constant 0 : i32
    return %arg0, %c0_i32 : i32, i32
  }
  func.func @transform_1(%arg0: i32) -> (i32, i32) {
    %c0_i32 = arith.constant 0 : i32
    %c0_i32_0 = arith.constant 0 : i32
    %c0_i32_1 = arith.constant 0 : i32
    return %c0_i32, %c0_i32_0 : i32, i32
  }
  func.func @transform_2(%arg0: i32) -> (i32, i32) {
    %c0_i32 = arith.constant 0 : i32
    %c0_i32_0 = arith.constant 0 : i32
    %c0_i32_1 = arith.constant 0 : i32
    return %c0_i32, %c0_i32_0 : i32, i32
  }
  func.func @transform_3(%arg0: i32) -> (i32, i32) {
    %c0_i32 = arith.constant 0 : i32
    %c0_i32_0 = arith.constant 0 : i32
    %c0_i32_1 = arith.constant 0 : i32
    return %c0_i32, %c0_i32_0 : i32, i32
  }
  func.func @transform_4(%arg0: i32) -> (i32, i32) {
    %c0_i32 = arith.constant 0 : i32
    %c0_i32_0 = arith.constant 0 : i32
    %c0_i32_1 = arith.constant 0 : i32
    return %c0_i32, %c0_i32_0 : i32, i32
  }
  func.func @transform_5(%arg0: i32) -> (i32, i32) {
    %c0_i32 = arith.constant 0 : i32
    %c0_i32_0 = arith.constant 0 : i32
    return %arg0, %c0_i32 : i32, i32
  }
}

</mosaic_0001>

<bundles_post_ra>
// kernel: feedforward.2
= control target key start
LH: loop header
LB: loop body
LE: loop exit
PB: predicated region body
PF: predicated region fallthrough
CT: control target
= control target key end

     0   :  { %s470_s9 = smov 0   ;;  %s472_s10 = smov 0   ;;  %s534_s0 = inlined_call_operand.vmem [shape: bf16[16,128], index: 0, kind: input, shape index: {}]   ;;  %s535_s1 = inlined_call_operand.vmem [shape: bf16[128,128], index: 1, kind: input, shape index: {}]   ;;  %s536_s2 = inlined_call_operand.vmem [shape: f32[2,2,128], index: 2, kind: output, shape index: {}]  }
   0x1   :  { %s474_s11 = smov 0  }
   0x2 LB: > { %s24_s12 = sadd.s32 1, %s447_s10  ;;  %p353_p0 = scmp.ge.s32.totalorder %s451_s11, 1  ;;  %s451_s11 = sphi %s474_s11, %s12_s11   ;;  %s447_s10 = sphi %s472_s10, %s538_s10   ;;  %s443_s9 = sphi %s470_s9, %s537_s9  }
   0x3   : > { %p26_p1 = scmp.ge.s32.totalorder %s24_s12, 2  ;;  %p127_p2 = scmp.lt.s32.totalorder %s451_s11, 3 }
   0x5   : > { %s540_s12 = smov (%p26_p1, %s24_s12), 0  ;;  %p128_p3 = pnand %p353_p0, %p127_p2 }
   0x6   : > { %v421_v0 = vld [vmem:[%s535_s1] sm:$0xff] (!%p128_p3)   ;;  %v453_v1 = vmov (!%p128_p3), 0.0   ;;  %v422_v2 = vld [vmem:[%s535_s1 + $0x8] sm:$0xff] (!%p128_p3)   ;;  %vm454_vm0 = vmmov (!%p128_p3), 0   ;;  %p149_p4 = scmp.lt.s32.totalorder (!%p128_p3), %s443_s9, 1  ;;  %v423_v3 = vld [vmem:[%s535_s1 + $0x10] sm:$0xff] (!%p128_p3)  }
   0x7   : > { %131 = sbr.rel (%p128_p3) target bundleno = 268 (0x10c), region = 28  ;;  %375 = vmatprep.subr.bf16.mxu0 (!%p128_p3), %v453_v1  ;;  %391 = vmatprep.mubr.msk.bf16.mxu0 (!%p128_p3), %vm454_vm0, %v453_v1  ;;  %v424_v4 = vld [vmem:[%s535_s1 + $0x18] sm:$0xff] (!%p128_p3)   ;;  %v425_v5 = vld [vmem:[%s535_s1 + $0x20] sm:$0xff] (!%p128_p3)   ;;  %v426_v6 = vld [vmem:[%s535_s1 + $0x28] sm:$0xff] (!%p128_p3)  }
   0x8   : > { %376 = vmatpush3.bf16.msra.mxu0 (!%p128_p3), %v421_v0  ;;  %v427_v7 = vld [vmem:[%s535_s1 + $0x30] sm:$0xff] (!%p128_p3)   ;;  %v428_v8 = vld [vmem:[%s535_s1 + $0x38] sm:$0xff] (!%p128_p3)  }
   0x9   : > { %377 = vmatprep.subr.bf16.mxu0 (!%p128_p3), %v453_v1 }
   0xc   : > { %378 = vmatpush3.bf16.msra.mxu0 (!%p128_p3), %v422_v2 }
   0xd   : > { %379 = vmatprep.subr.bf16.mxu0 (!%p128_p3), %v453_v1 }
   0xe   : > { %s542_s9 = smov (!%p149_p4, %s443_s9), 1 }
   0xf   : > { %s355_s19 = sshll.u32 %s542_s9, 1  ;;  %s354_s3 = sshll.u32 %s542_s9, 2 }
  0x10   : > { %s500_s22 = scalar_lea.vmem %s536_s2, %s355_s19  ;;  %380 = vmatpush3.bf16.msra.mxu0 %v423_v3  ;;  %s152_s8 = scalar_lea.vmem %s534_s0, %s354_s3 }
  0x11   : > { %163 = vst [vmem:[%s500_s22] sm:$0x3] %v453_v1  ;;  %381 = vmatprep.subr.bf16.mxu0 %v453_v1  ;;  %v164_v9 = vld [vmem:[%s152_s8] sm:$0xf] }
  0x14   : > { %382 = vmatpush3.bf16.msra.mxu0 %v424_v4 }
  0x15   : > { %383 = vmatprep.subr.bf16.mxu0 %v453_v1 }
  0x18   : > { %384 = vmatpush3.bf16.msra.mxu0 %v425_v5  ;;  %v269_v24 = vld [vmem:[%s500_s22] sm:$0x1]  ;;  %v278_v27 = vld [vmem:[%s500_s22 + $0x1] sm:$0x1] }
  0x19   : > { %385 = vmatprep.subr.bf16.mxu0 %v453_v1 }
  0x1c   : > { %386 = vmatpush3.bf16.msra.mxu0 %v426_v6 }
  0x1d   : > { %387 = vmatprep.subr.bf16.mxu0 %v453_v1 }
  0x20   : > { %388 = vmatpush3.bf16.msra.mxu0 %v427_v7 }
  0x21   : > { %389 = vmatprep.subr.bf16.mxu0 %v453_v1 }
  0x24   : > { %390 = vmatpush3.bf16.msra.mxu0 %v428_v8 }
  0x27   : > { %392 = vmatmul.mubr.bf16.vlgmr.msra.gmra.mrb[0].mxu0 %v164_v9 }
  0xfa   : > { %v263_v10 = vpop.f32.mrb[0].mxu0 }
  0xfb   : > { %v270_v11 = vrot.slane %v263_v10, 4  ;;  %v279_v12 = vmul.f32 %v263_v10, %v263_v10  ;;  %v393_v13 = vpop.f32.mrb[1].mxu0 }
  0xfc   : > { %v266_v14 = vpop.f32.mrb[2].mxu0 }
  0xfd   : > { %v271_v15 = vadd.f32 %v270_v11, %v263_v10  ;;  %v280_v16 = vrot.slane %v279_v12, 4  ;;  %v394_v17 = vpop.f32.mrb[3].mxu0 }
  0xff   : > { %v272_v18 = vrot.slane %v271_v15, 2  ;;  %v281_v19 = vadd.f32 %v280_v16, %v279_v12 }
 0x101   : > { %v273_v20 = vadd.f32 %v272_v18, %v271_v15  ;;  %v282_v21 = vrot.slane %v281_v19, 2 }
 0x103   : > { %v274_v22 = vrot.slane %v273_v20, 1  ;;  %v283_v23 = vadd.f32 %v282_v21, %v281_v19 }
 0x105   : > { %v275_v25 = vadd.f32 %v274_v22, %v273_v20  ;;  %v284_v26 = vrot.slane %v283_v23, 1 }
 0x107   : > { %v276_v28 = vadd.f32 %v275_v25, %v269_v24  ;;  %v285_v29 = vadd.f32 %v284_v26, %v283_v23 }
 0x109   : > { %277 = vst [vmem:[%s500_s22] sm:$0x1] %v276_v28  ;;  %v286_v30 = vadd.f32 %v285_v29, %v278_v27 }
 0x10b   : > { %287 = vst [vmem:[%s500_s22 + $0x1] sm:$0x1] %v286_v30 }
 0x10c PF: > { %s12_s11 = sadd.s32 1, %s451_s11   ;;  %s537_s9 = smov %s447_s10 }
 0x10d   : > { %p9_p5 = scmp.ge.s32.totalorder %s12_s11, 4   ;;  %s538_s10 = smov %s540_s12 }
 0x10f   :  { %11 = sbr.rel (!%p9_p5) target bundleno = 2 (0x2), region = 62 }

// kernel: feedforward.3
= control target key start
LH: loop header
LB: loop body
LE: loop exit
PB: predicated region body
PF: predicated region fallthrough
CT: control target
= control target key end

     0   :  { %s663_s18 = smov 0   ;;  %s745_s0 = inlined_call_operand.vmem [shape: bf16[16,128], index: 0, kind: input, shape index: {}]   ;;  %s746_s1 = inlined_call_operand.vmem [shape: bf16[128,128], index: 1, kind: input, shape index: {}]   ;;  %s747_s2 = inlined_call_operand.vmem [shape: f32[2,128], index: 2, kind: input, shape index: {}]   ;;  %s748_s3 = inlined_call_operand.vmem [shape: bf16[128,128], index: 3, kind: input, shape index: {}]   ;;  %s749_s4 = inlined_call_operand.vmem [shape: f32[1,128], index: 4, kind: input, shape index: {}]   ;;  %s750_s5 = inlined_call_operand.vmem [shape: f32[16,128], index: 5, kind: output, shape index: {}]  }
   0x1 LB: > { %s509_s19 = sadd.s32 4294967295, %s629_s18   ;;  %p513_p0 = scmp.ge.s32.totalorder %s629_s18, 1  ;;  %s629_s18 = sphi %s663_s18, %s15_s18  }
   0x2   : > { %p186_p1 = scmp.lt.s32.totalorder %s629_s18, 3 }
   0x4   : > { %p187_p2 = pnand %p513_p0, %p186_p1 }
   0x5   : > { %v605_v0 = vld [vmem:[%s746_s1] sm:$0xff] (!%p187_p2)   ;;  %v631_v1 = vmov (!%p187_p2), 0.0   ;;  %v606_v2 = vld [vmem:[%s746_s1 + $0x8] sm:$0xff] (!%p187_p2)   ;;  %vm632_vm0 = vmmov (!%p187_p2), 0   ;;  %v607_v3 = vld [vmem:[%s746_s1 + $0x10] sm:$0xff] (!%p187_p2)   ;;  %p212_p3 = scmp.lt.s32.totalorder (!%p187_p2), %s509_s19, 1 }
   0x6   : > { %190 = sbr.rel (%p187_p2) target bundleno = 488 (0x1e8), region = 40  ;;  %555 = vmatprep.subr.bf16.mxu0 (!%p187_p2), %v631_v1  ;;  %575 = vmatprep.subr.bf16.mxu1 (!%p187_p2), %v631_v1  ;;  %v608_v4 = vld [vmem:[%s746_s1 + $0x18] sm:$0xff] (!%p187_p2)   ;;  %v613_v5 = vld [vmem:[%s748_s3] sm:$0xff] (!%p187_p2)   ;;  %v614_v6 = vld [vmem:[%s748_s3 + $0x8] sm:$0xff] (!%p187_p2)  }
   0x7   : > { %556 = vmatpush3.bf16.msra.mxu0 (!%p187_p2), %v605_v0  ;;  %571 = vmatprep.mubr.msk.bf16.mxu0 (!%p187_p2), %vm632_vm0, %v631_v1  ;;  %v609_v7 = vld [vmem:[%s746_s1 + $0x20] sm:$0xff] (!%p187_p2)   ;;  %v610_v8 = vld [vmem:[%s746_s1 + $0x28] sm:$0xff] (!%p187_p2)   ;;  %v611_v9 = vld [vmem:[%s746_s1 + $0x30] sm:$0xff] (!%p187_p2)  }
   0x8   : > { %557 = vmatprep.subr.bf16.mxu0 (!%p187_p2), %v631_v1  ;;  %591 = vmatprep.mubr.msk.bf16.mxu1 (!%p187_p2), %vm632_vm0, %v631_v1  ;;  %v612_v10 = vld [vmem:[%s746_s1 + $0x38] sm:$0xff] (!%p187_p2)   ;;  %v615_v12 = vld [vmem:[%s748_s3 + $0x10] sm:$0xff] (!%p187_p2)   ;;  %v617_v14 = vld [vmem:[%s748_s3 + $0x20] sm:$0xff] (!%p187_p2)  }
   0x9   : > { %576 = vmatpush3.bf16.msra.mxu1 (!%p187_p2), %v613_v5  ;;  %v616_v13 = vld [vmem:[%s748_s3 + $0x18] sm:$0xff] (!%p187_p2)   ;;  %v618_v15 = vld [vmem:[%s748_s3 + $0x28] sm:$0xff] (!%p187_p2)   ;;  %v619_v16 = vld [vmem:[%s748_s3 + $0x30] sm:$0xff] (!%p187_p2)  }
   0xa   : > { %577 = vmatprep.subr.bf16.mxu1 (!%p187_p2), %v631_v1  ;;  %v620_v17 = vld [vmem:[%s748_s3 + $0x38] sm:$0xff] (!%p187_p2)   ;;  %v524_v18 = vld [vmem:[%s747_s2] ss:$0 sm:$0xff] (!%p187_p2)  ;;  %v525_v20 = vld [vmem:[%s747_s2 + $0x1] ss:$0 sm:$0xff] (!%p187_p2) }
   0xb   : > { %558 = vmatpush3.bf16.msra.mxu0 (!%p187_p2), %v606_v2  ;;  %v526_v32 = vld [vmem:[%s749_s4] ss:$0 sm:$0xff] (!%p187_p2) }
   0xc   : > { %559 = vmatprep.subr.bf16.mxu0 (!%p187_p2), %v631_v1 }
   0xd   : > { %578 = vmatpush3.bf16.msra.mxu1 %v614_v6  ;;  %s752_s19 = smov (!%p212_p3, %s509_s19), 1 }
   0xe   : > { %579 = vmatprep.subr.bf16.mxu1 %v631_v1  ;;  %s514_s13 = sshll.u32 %s752_s19, 2  ;;  %s515_s12 = sshll.u32 %s752_s19, 3 }
   0xf   : > { %560 = vmatpush3.bf16.msra.mxu0 %v607_v3  ;;  %s215_s20 = scalar_lea.vmem %s745_s0, %s514_s13  ;;  %s219_s17 = scalar_lea.vmem %s750_s5, %s515_s12 }
  0x10   : > { %561 = vmatprep.subr.bf16.mxu0 %v631_v1  ;;  %v221_v11 = vld [vmem:[%s215_s20] sm:$0xf] }
  0x11   : > { %580 = vmatpush3.bf16.msra.mxu1 %v615_v12 }
  0x12   : > { %581 = vmatprep.subr.bf16.mxu1 %v631_v1 }
  0x13   : > { %562 = vmatpush3.bf16.msra.mxu0 %v608_v4 }
  0x14   : > { %563 = vmatprep.subr.bf16.mxu0 %v631_v1 }
  0x15   : > { %582 = vmatpush3.bf16.msra.mxu1 %v616_v13 }
  0x16   : > { %583 = vmatprep.subr.bf16.mxu1 %v631_v1 }
  0x17   : > { %564 = vmatpush3.bf16.msra.mxu0 %v609_v7 }
  0x18   : > { %565 = vmatprep.subr.bf16.mxu0 %v631_v1 }
  0x19   : > { %584 = vmatpush3.bf16.msra.mxu1 %v617_v14 }
  0x1a   : > { %585 = vmatprep.subr.bf16.mxu1 %v631_v1 }
  0x1b   : > { %566 = vmatpush3.bf16.msra.mxu0 %v610_v8 }
  0x1c   : > { %567 = vmatprep.subr.bf16.mxu0 %v631_v1 }
  0x1d   : > { %586 = vmatpush3.bf16.msra.mxu1 %v618_v15 }
  0x1e   : > { %587 = vmatprep.subr.bf16.mxu1 %v631_v1 }
  0x1f   : > { %568 = vmatpush3.bf16.msra.mxu0 %v611_v9 }
  0x20   : > { %569 = vmatprep.subr.bf16.mxu0 %v631_v1 }
  0x21   : > { %588 = vmatpush3.bf16.msra.mxu1 %v619_v16 }
  0x22   : > { %589 = vmatprep.subr.bf16.mxu1 %v631_v1 }
  0x23   : > { %570 = vmatpush3.bf16.msra.mxu0 %v612_v10 }
  0x25   : > { %590 = vmatpush3.bf16.msra.mxu1 %v620_v17 }
  0x26   : > { %572 = vmatmul.mubr.bf16.vlgmr.msra.gmra.mrb[0].mxu0 %v221_v11 }
  0xf9   : > { %v320_v19 = vpop.f32.mrb[0].mxu0 }
  0xfa   : > { %v331_v21 = vmul.f32 %v524_v18, %v320_v19  ;;  %v573_v22 = vpop.f32.mrb[1].mxu0 }
  0xfb   : > { %v323_v23 = vpop.f32.mrb[2].mxu0 }
  0xfc   : > { %v337_v24 = vadd.f32 %v525_v20, %v331_v21  ;;  %v574_v25 = vpop.f32.mrb[3].mxu0 }
  0xfe   : > { %v339_v26 = vmul.f32 0.70710677, %v337_v24  ;;  %v338_v28 = vmul.f32 0.5, %v337_v24 }
 0x100   : > { %621 = verf.f32 %v339_v26 }
 0x10a   : > { %v622_v27 = vpop.eup %621 }
 0x10b   : > { %v341_v29 = vadd.f32 1.0, %v622_v27 }
 0x10d   : > { %v342_v30 = vmul.f32 %v341_v29, %v338_v28 }
 0x10f   : > { %v343_v31 = vpack.c.bf16 %v342_v30, %v342_v30 }
 0x111   : > { %592 = vmatmul.mubr.bf16.vlgmr.msra.gmra.mrb[0].mxu1 %v343_v31 }
 0x1e4   : > { %v449_v33 = vpop.f32.mrb[0].mxu1 }
 0x1e5   : > { %v450_v34 = vadd.f32 %v526_v32, %v449_v33  ;;  %v593_v35 = vpop.f32.mrb[1].mxu1 }
 0x1e6   : > { %v452_v36 = vpop.f32.mrb[2].mxu1 }
 0x1e7   : > { %455 = vst [vmem:[%s219_s17] sm:$0xff] %v450_v34  ;;  %v594_v37 = vpop.f32.mrb[3].mxu1 }
 0x1e8 PF: > { %s15_s18 = sadd.s32 1, %s629_s18  }
 0x1e9   : > { %p12_p4 = scmp.ge.s32.totalorder %s15_s18, 4  }
 0x1eb   :  { %14 = sbr.rel (!%p12_p4) target bundleno = 1 (0x1), region = 70 }

</bundles_post_ra>
